<compile_context>
chip_gen: v5e
topology: v5e:2x2
jax: 0.10.0
libtpu: 0.0.40
codegen_flags: <defaults>
</compile_context>

<pallas_src>
import functools

import jax
import jax.numpy as jnp
from jax.experimental import pallas as pl
from jax.experimental.pallas import tpu as pltpu


def _basic_block_kernel(x_ref, w_ref, o_ref, xflat_ref, p_ref, acc_ref, *,
                        bsz, cin, cout, h, w, hout, wout, stride, eps, halo):
    """Fused conv3x3 + InstanceNorm2d(affine=False) + ReLU for B samples.

    x_ref    : (B, Cin, H*W)          lane-dense flattened NCHW samples
    w_ref    : (Cout, 9*Cin)          weights, tap-major / cin-minor columns
    o_ref    : (B, Cout, Hout*Wout)   lane-dense channel-major output
    xflat_ref: (Cin, 2*halo + B*H*W)  flat working slab (halo absorbs shifts)
    p_ref    : (9*Cin, B*H*W)         im2col patch matrix
    acc_ref  : (Cout, B*H*W)          f32 conv accumulator
    """
    hw = h * w
    bhw = bsz * hw

    # --- 1) Stage the B samples into one flat, lane-dense slab. -------------
    # Aligned, contiguous (Cin, H*W) copies.  Halo lanes are never zeroed:
    # every read that lands in them is replaced by 0 through the masks below
    # (jnp.where selects, so uninitialised bits cannot leak through).
    for b in range(bsz):
        xflat_ref[:, halo + b * hw: halo + (b + 1) * hw] = x_ref[b]

    # --- 2) Per-output-pixel coordinates for the boundary masks. ------------
    q = jax.lax.broadcasted_iota(jnp.int32, (1, bhw), 1)
    pix = (q & (hw - 1)) if (hw & (hw - 1)) == 0 else q % hw      # idx in sample
    x_pos = (pix & (w - 1)) if (w & (w - 1)) == 0 else pix % w    # column

    # --- 3) im2col by shift-and-mask: 9 statically offset lane slices. ------
    for dy in (-1, 0, 1):
        for dx in (-1, 0, 1):
            tap = (dy + 1) * 3 + (dx + 1)
            shift = dy * w + dx
            slab = xflat_ref[:, halo + shift: halo + shift + bhw]  # (Cin, B*HW)
            conds = []
            if dy == -1:
                conds.append(pix >= w)            # top row invalid
            elif dy == 1:
                conds.append(pix < hw - w)        # bottom row invalid
            if dx == -1:
                conds.append(x_pos >= 1)          # left column invalid
            elif dx == 1:
                conds.append(x_pos <= w - 2)      # right column invalid
            if conds:
                valid = conds[0]
                for c in conds[1:]:
                    valid = jnp.logical_and(valid, c)
                slab = jnp.where(valid, slab, 0.0)
            p_ref[tap * cin:(tap + 1) * cin, :] = slab

    # --- 4) One MXU matmul over all 9 taps and all B samples, f32 acc. ------
    acc_ref[...] = jnp.dot(w_ref[...], p_ref[...],
                           preferred_element_type=jnp.float32)

    # --- 5) Per-sample InstanceNorm2d (affine=False) + ReLU. -----------------
    acc = acc_ref[...]
    for b in range(bsz):
        sub = acc[:, b * hw:(b + 1) * hw]               # aligned lane slice
        if stride > 1:
            # TODO(synk): fallback path — dense conv then subsample.
            sub = sub.reshape(cout, h, w)[:, ::stride, ::stride]
            sub = sub.reshape(cout, hout * wout)
        inv_n = 1.0 / (hout * wout)
        mean = jnp.sum(sub, axis=1, keepdims=True) * inv_n
        centered = sub - mean
        var = jnp.sum(centered * centered, axis=1, keepdims=True) * inv_n
        y = centered * jax.lax.rsqrt(var + eps)
        o_ref[b] = jnp.maximum(y, 0.0).astype(o_ref.dtype)


def _pick_batch_block(n, hw, cin, cout, itemsize):
    """Largest divisor of n (capped at 8) whose per-step buffers fit a budget.

    Batching is preferred over keeping >=2 grid steps at tiny N: fattening the
    matmul / amortizing per-step overhead was the top review priority.
    """
    per_sample = hw * (10 * cin * itemsize             # flat slab + 9-tap patches
                       + cout * 4                      # f32 accumulator
                       + 2 * (cin + cout) * itemsize)  # double-buffered in/out
    cap = max(1, min(8, (24 * 2 ** 20) // max(per_sample, 1)))
    best = 1
    for b in range(1, n + 1):
        if n % b == 0 and b <= cap:
            best = b
    return best


def basic_block_conv(x_nchw, weight_oihw, bias=None, *, stride=1, eps=1e-5,
                     batch_block=None):
    """BasicBlock(type='Conv') forward. Input/output are NCHW (PyTorch layout).

    NOTE: `bias` is accepted for API fidelity but intentionally unused — the
    non-affine InstanceNorm2d that immediately follows subtracts the
    per-channel mean, which cancels any per-channel Conv2d bias exactly.
    This cancellation only holds for this Conv -> InstanceNorm(affine=False)
    fusion; do not reuse without the norm.
    """
    del bias
    n, cin, h, w = x_nchw.shape
    cout, cin_w, kh, kw = weight_oihw.shape
    assert (kh, kw) == (3, 3) and cin_w == cin, "BasicBlock Conv is 3x3"

    hout = (h + 2 - 3) // stride + 1
    wout = (w + 2 - 3) // stride + 1
    hw_out = hout * wout
    hw = h * w
    itemsize = x_nchw.dtype.itemsize

    bsz = batch_block or _pick_batch_block(n, hw, cin, cout, itemsize)
    assert n % bsz == 0, "batch_block must divide the batch size"
    halo = ((w + 1 + 127) // 128) * 128          # >= max tap shift, 128-aligned

    # Lane-dense views: free, contiguous reshapes (no HBM transpose pass).
    x_flat = x_nchw.reshape(n, cin, hw)
    # OIHW -> (Cout, 9*Cin); tap-major / cin-minor matches the im2col rows.
    w_mat = jnp.transpose(weight_oihw, (0, 2, 3, 1)).reshape(cout, 9 * cin)

    kernel = functools.partial(_basic_block_kernel, bsz=bsz, cin=cin, cout=cout,
                               h=h, w=w, hout=hout, wout=wout, stride=stride,
                               eps=eps, halo=halo)

    # Size the VMEM limit from the actual buffers instead of a hard constant.
    scratch_bytes = (cin * (2 * halo + bsz * hw) * itemsize
                     + 9 * cin * bsz * hw * itemsize
                     + cout * bsz * hw * 4)
    io_bytes = 2 * (bsz * cin * hw * itemsize
                    + cout * 9 * cin * itemsize
                    + bsz * cout * hw_out * itemsize)
    try:
        phys_vmem = int(pltpu.get_tpu_info().vmem_capacity_bytes)
    except Exception:
        phys_vmem = 64 * 2 ** 20
    vmem_limit = int(min(max(2 * (scratch_bytes + io_bytes), 32 * 2 ** 20),
                         0.75 * phys_vmem))

    # Out/in block last-two dims always equal the full array dims, so the
    # (8,128) BlockSpec rule is satisfied for any Cout / hw configuration.
    out_flat = pl.pallas_call(
        kernel,
        out_shape=jax.ShapeDtypeStruct((n, cout, hw_out), x_nchw.dtype),
        grid=(n // bsz,),
        in_specs=[
            pl.BlockSpec((bsz, cin, hw), lambda i: (i, 0, 0)),
            pl.BlockSpec((cout, 9 * cin), lambda i: (0, 0)),
        ],
        out_specs=pl.BlockSpec((bsz, cout, hw_out), lambda i: (i, 0, 0)),
        scratch_shapes=[
            pltpu.VMEM((cin, 2 * halo + bsz * hw), x_nchw.dtype),  # flat slab
            pltpu.VMEM((9 * cin, bsz * hw), x_nchw.dtype),         # im2col
            pltpu.VMEM((cout, bsz * hw), jnp.float32),             # f32 acc
        ],
        compiler_params=pltpu.CompilerParams(
            dimension_semantics=("parallel",),
            vmem_limit_bytes=vmem_limit),
    )(x_flat, w_mat)

    # Free (contiguous) reshape back to NCHW — no transpose pass needed.
    return out_flat.reshape(n, cout, hout, wout)


def _reference(x_nchw, weight_oihw, bias, *, stride=1, eps=1e-5):
    """Plain-JAX reference matching the PyTorch module semantics (with bias)."""
    conv = jax.lax.conv_general_dilated(
        x_nchw, weight_oihw,
        window_strides=(stride, stride),
        padding=((1, 1), (1, 1)),
        dimension_numbers=("NCHW", "OIHW", "NCHW"),
    ) + bias[None, :, None, None]
    mean = conv.mean(axis=(2, 3), keepdims=True)
    var = jnp.square(conv - mean).mean(axis=(2, 3), keepdims=True)
    return jnp.maximum((conv - mean) * jax.lax.rsqrt(var + eps), 0.0)


if __name__ == "__main__":
    # BasicBlock('Conv', inplane=4, outplane=8, stride=1) at small shapes.
    key = jax.random.PRNGKey(0)
    kx, kw_, kb = jax.random.split(key, 3)

    N, Cin, H, W = 2, 4, 16, 16
    Cout, stride = 8, 1

    x = jax.random.normal(kx, (N, Cin, H, W), dtype=jnp.float32)
    weight = 0.1 * jax.random.normal(kw_, (Cout, Cin, 3, 3), dtype=jnp.float32)
    bias = 0.1 * jax.random.normal(kb, (Cout,), dtype=jnp.float32)

    out = basic_block_conv(x, weight, bias, stride=stride)
    out = jax.block_until_ready(out)

    ref = _reference(x, weight, bias, stride=stride)
    assert out.shape == ref.shape == (N, Cout, H, W)
    assert jnp.allclose(out, ref, atol=1e-4, rtol=1e-4), "mismatch vs reference"

    print("KERNEL_OK")
</pallas_src>

<mosaic_0001>
module attributes {stable_mosaic.version = 11 : i64} {
  func.func @_basic_block_kernel(%arg0: i32, %arg1: memref<2x4x256xf32, #tpu.memory_space<vmem>>, %arg2: memref<8x36xf32, #tpu.memory_space<vmem>>, %arg3: memref<2x8x256xf32, #tpu.memory_space<vmem>>, %arg4: memref<4x768xf32, #tpu.memory_space<vmem>>, %arg5: memref<36x512xf32, #tpu.memory_space<vmem>>, %arg6: memref<8x512xf32, #tpu.memory_space<vmem>>) attributes {dimension_semantics = [#tpu.dimension_semantics<parallel>], iteration_bounds = array<i64: 1>, scalar_prefetch = 0 : i64, scratch_operands = 3 : i64, tpu.core_type = #tpu.core_type<tc>, window_params = [{transform_indices = @transform_0, window_bounds = array<i64: 2, 4, 256>}, {pipeline_mode = #tpu.pipeline_mode<synchronous>, transform_indices = @transform_1, window_bounds = array<i64: 8, 36>}, {transform_indices = @transform_2, window_bounds = array<i64: 2, 8, 256>}]} {
    %c0 = arith.constant 0 : index
    %c0_0 = arith.constant 0 : index
    %c0_1 = arith.constant 0 : index
    %0 = vector.load %arg1[%c0, %c0_0, %c0_1] : memref<2x4x256xf32, #tpu.memory_space<vmem>>, vector<1x4x256xf32>
    %1 = vector.shape_cast %0 : vector<1x4x256xf32> to vector<4x256xf32>
    %c0_2 = arith.constant 0 : index
    %c128 = arith.constant 128 : index
    %2 = vector.load %arg4[%c0_2, %c128] : memref<4x768xf32, #tpu.memory_space<vmem>>, vector<4x256xf32>
    tpu.vector_store %arg4[%c0_2, %c128], %1 {strides = array<i32>} : memref<4x768xf32, #tpu.memory_space<vmem>>, vector<4x256xf32>,
    %c1 = arith.constant 1 : index
    %c0_3 = arith.constant 0 : index
    %c0_4 = arith.constant 0 : index
    %3 = vector.load %arg1[%c1, %c0_3, %c0_4] : memref<2x4x256xf32, #tpu.memory_space<vmem>>, vector<1x4x256xf32>
    %4 = vector.shape_cast %3 : vector<1x4x256xf32> to vector<4x256xf32>
    %c0_5 = arith.constant 0 : index
    %c384 = arith.constant 384 : index
    %5 = vector.load %arg4[%c0_5, %c384] : memref<4x768xf32, #tpu.memory_space<vmem>>, vector<4x256xf32>
    tpu.vector_store %arg4[%c0_5, %c384], %4 {strides = array<i32>} : memref<4x768xf32, #tpu.memory_space<vmem>>, vector<4x256xf32>,
    %6 = tpu.iota {dimensions = array<i32: 1>} : vector<1x512xi32>
    %c255_i32 = arith.constant 255 : i32
    %7 = vector.broadcast %c255_i32 : i32 to vector<1x512xi32>
    %8 = arith.andi %6, %7 : vector<1x512xi32>
    %c15_i32 = arith.constant 15 : i32
    %9 = vector.broadcast %c15_i32 : i32 to vector<1x512xi32>
    %10 = arith.andi %8, %9 : vector<1x512xi32>
    %c0_6 = arith.constant 0 : index
    %c111 = arith.constant 111 : index
    %11 = vector.load %arg4[%c0_6, %c111] : memref<4x768xf32, #tpu.memory_space<vmem>>, vector<4x512xf32>
    %c16_i32 = arith.constant 16 : i32
    %12 = vector.broadcast %c16_i32 : i32 to vector<1x512xi32>
    %13 = arith.cmpi sge, %8, %12 : vector<1x512xi32>
    %c1_i32 = arith.constant 1 : i32
    %14 = vector.broadcast %c1_i32 : i32 to vector<1x512xi32>
    %15 = arith.cmpi sge, %10, %14 : vector<1x512xi32>
    %16 = arith.andi %13, %15 : vector<1x512xi1>
    %cst = arith.constant 0.000000e+00 : f32
    %17 = vector.shape_cast %16 : vector<1x512xi1> to vector<1x512xi1>
    %18 = vector.broadcast %17 : vector<1x512xi1> to vector<4x512xi1>
    %19 = vector.broadcast %cst : f32 to vector<4x512xf32>
    %20 = arith.select %18, %11, %19 : vector<4x512xi1>, vector<4x512xf32>
    %c0_7 = arith.constant 0 : index
    %c0_8 = arith.constant 0 : index
    %21 = vector.load %arg5[%c0_7, %c0_8] : memref<36x512xf32, #tpu.memory_space<vmem>>, vector<4x512xf32>
    tpu.vector_store %arg5[%c0_7, %c0_8], %20 {strides = array<i32>} : memref<36x512xf32, #tpu.memory_space<vmem>>, vector<4x512xf32>,
    %c0_9 = arith.constant 0 : index
    %c112 = arith.constant 112 : index
    %22 = vector.load %arg4[%c0_9, %c112] : memref<4x768xf32, #tpu.memory_space<vmem>>, vector<4x512xf32>
    %c16_i32_10 = arith.constant 16 : i32
    %23 = vector.broadcast %c16_i32_10 : i32 to vector<1x512xi32>
    %24 = arith.cmpi sge, %8, %23 : vector<1x512xi32>
    %cst_11 = arith.constant 0.000000e+00 : f32
    %25 = vector.shape_cast %24 : vector<1x512xi1> to vector<1x512xi1>
    %26 = vector.broadcast %25 : vector<1x512xi1> to vector<4x512xi1>
    %27 = vector.broadcast %cst_11 : f32 to vector<4x512xf32>
    %28 = arith.select %26, %22, %27 : vector<4x512xi1>, vector<4x512xf32>
    %c4 = arith.constant 4 : index
    %c0_12 = arith.constant 0 : index
    %29 = vector.load %arg5[%c4, %c0_12] : memref<36x512xf32, #tpu.memory_space<vmem>>, vector<4x512xf32>
    tpu.vector_store %arg5[%c4, %c0_12], %28 {strides = array<i32>} : memref<36x512xf32, #tpu.memory_space<vmem>>, vector<4x512xf32>,
    %c0_13 = arith.constant 0 : index
    %c113 = arith.constant 113 : index
    %30 = vector.load %arg4[%c0_13, %c113] : memref<4x768xf32, #tpu.memory_space<vmem>>, vector<4x512xf32>
    %c16_i32_14 = arith.constant 16 : i32
    %31 = vector.broadcast %c16_i32_14 : i32 to vector<1x512xi32>
    %32 = arith.cmpi sge, %8, %31 : vector<1x512xi32>
    %c14_i32 = arith.constant 14 : i32
    %33 = vector.broadcast %c14_i32 : i32 to vector<1x512xi32>
    %34 = arith.cmpi sle, %10, %33 : vector<1x512xi32>
    %35 = arith.andi %32, %34 : vector<1x512xi1>
    %cst_15 = arith.constant 0.000000e+00 : f32
    %36 = vector.shape_cast %35 : vector<1x512xi1> to vector<1x512xi1>
    %37 = vector.broadcast %36 : vector<1x512xi1> to vector<4x512xi1>
    %38 = vector.broadcast %cst_15 : f32 to vector<4x512xf32>
    %39 = arith.select %37, %30, %38 : vector<4x512xi1>, vector<4x512xf32>
    %c8 = arith.constant 8 : index
    %c0_16 = arith.constant 0 : index
    %40 = vector.load %arg5[%c8, %c0_16] : memref<36x512xf32, #tpu.memory_space<vmem>>, vector<4x512xf32>
    tpu.vector_store %arg5[%c8, %c0_16], %39 {strides = array<i32>} : memref<36x512xf32, #tpu.memory_space<vmem>>, vector<4x512xf32>,
    %c0_17 = arith.constant 0 : index
    %c127 = arith.constant 127 : index
    %41 = vector.load %arg4[%c0_17, %c127] : memref<4x768xf32, #tpu.memory_space<vmem>>, vector<4x512xf32>
    %c1_i32_18 = arith.constant 1 : i32
    %42 = vector.broadcast %c1_i32_18 : i32 to vector<1x512xi32>
    %43 = arith.cmpi sge, %10, %42 : vector<1x512xi32>
    %cst_19 = arith.constant 0.000000e+00 : f32
    %44 = vector.shape_cast %43 : vector<1x512xi1> to vector<1x512xi1>
    %45 = vector.broadcast %44 : vector<1x512xi1> to vector<4x512xi1>
    %46 = vector.broadcast %cst_19 : f32 to vector<4x512xf32>
    %47 = arith.select %45, %41, %46 : vector<4x512xi1>, vector<4x512xf32>
    %c12 = arith.constant 12 : index
    %c0_20 = arith.constant 0 : index
    %48 = vector.load %arg5[%c12, %c0_20] : memref<36x512xf32, #tpu.memory_space<vmem>>, vector<4x512xf32>
    tpu.vector_store %arg5[%c12, %c0_20], %47 {strides = array<i32>} : memref<36x512xf32, #tpu.memory_space<vmem>>, vector<4x512xf32>,
    %c0_21 = arith.constant 0 : index
    %c128_22 = arith.constant 128 : index
    %49 = vector.load %arg4[%c0_21, %c128_22] : memref<4x768xf32, #tpu.memory_space<vmem>>, vector<4x512xf32>
    %c16 = arith.constant 16 : index
    %c0_23 = arith.constant 0 : index
    %50 = vector.load %arg5[%c16, %c0_23] : memref<36x512xf32, #tpu.memory_space<vmem>>, vector<4x512xf32>
    tpu.vector_store %arg5[%c16, %c0_23], %49 {strides = array<i32>} : memref<36x512xf32, #tpu.memory_space<vmem>>, vector<4x512xf32>,
    %c0_24 = arith.constant 0 : index
    %c129 = arith.constant 129 : index
    %51 = vector.load %arg4[%c0_24, %c129] : memref<4x768xf32, #tpu.memory_space<vmem>>, vector<4x512xf32>
    %c14_i32_25 = arith.constant 14 : i32
    %52 = vector.broadcast %c14_i32_25 : i32 to vector<1x512xi32>
    %53 = arith.cmpi sle, %10, %52 : vector<1x512xi32>
    %cst_26 = arith.constant 0.000000e+00 : f32
    %54 = vector.shape_cast %53 : vector<1x512xi1> to vector<1x512xi1>
    %55 = vector.broadcast %54 : vector<1x512xi1> to vector<4x512xi1>
    %56 = vector.broadcast %cst_26 : f32 to vector<4x512xf32>
    %57 = arith.select %55, %51, %56 : vector<4x512xi1>, vector<4x512xf32>
    %c20 = arith.constant 20 : index
    %c0_27 = arith.constant 0 : index
    %58 = vector.load %arg5[%c20, %c0_27] : memref<36x512xf32, #tpu.memory_space<vmem>>, vector<4x512xf32>
    tpu.vector_store %arg5[%c20, %c0_27], %57 {strides = array<i32>} : memref<36x512xf32, #tpu.memory_space<vmem>>, vector<4x512xf32>,
    %c0_28 = arith.constant 0 : index
    %c143 = arith.constant 143 : index
    %59 = vector.load %arg4[%c0_28, %c143] : memref<4x768xf32, #tpu.memory_space<vmem>>, vector<4x512xf32>
    %c240_i32 = arith.constant 240 : i32
    %60 = vector.broadcast %c240_i32 : i32 to vector<1x512xi32>
    %61 = arith.cmpi slt, %8, %60 : vector<1x512xi32>
    %c1_i32_29 = arith.constant 1 : i32
    %62 = vector.broadcast %c1_i32_29 : i32 to vector<1x512xi32>
    %63 = arith.cmpi sge, %10, %62 : vector<1x512xi32>
    %64 = arith.andi %61, %63 : vector<1x512xi1>
    %cst_30 = arith.constant 0.000000e+00 : f32
    %65 = vector.shape_cast %64 : vector<1x512xi1> to vector<1x512xi1>
    %66 = vector.broadcast %65 : vector<1x512xi1> to vector<4x512xi1>
    %67 = vector.broadcast %cst_30 : f32 to vector<4x512xf32>
    %68 = arith.select %66, %59, %67 : vector<4x512xi1>, vector<4x512xf32>
    %c24 = arith.constant 24 : index
    %c0_31 = arith.constant 0 : index
    %69 = vector.load %arg5[%c24, %c0_31] : memref<36x512xf32, #tpu.memory_space<vmem>>, vector<4x512xf32>
    tpu.vector_store %arg5[%c24, %c0_31], %68 {strides = array<i32>} : memref<36x512xf32, #tpu.memory_space<vmem>>, vector<4x512xf32>,
    %c0_32 = arith.constant 0 : index
    %c144 = arith.constant 144 : index
    %70 = vector.load %arg4[%c0_32, %c144] : memref<4x768xf32, #tpu.memory_space<vmem>>, vector<4x512xf32>
    %c240_i32_33 = arith.constant 240 : i32
    %71 = vector.broadcast %c240_i32_33 : i32 to vector<1x512xi32>
    %72 = arith.cmpi slt, %8, %71 : vector<1x512xi32>
    %cst_34 = arith.constant 0.000000e+00 : f32
    %73 = vector.shape_cast %72 : vector<1x512xi1> to vector<1x512xi1>
    %74 = vector.broadcast %73 : vector<1x512xi1> to vector<4x512xi1>
    %75 = vector.broadcast %cst_34 : f32 to vector<4x512xf32>
    %76 = arith.select %74, %70, %75 : vector<4x512xi1>, vector<4x512xf32>
    %c28 = arith.constant 28 : index
    %c0_35 = arith.constant 0 : index
    %77 = vector.load %arg5[%c28, %c0_35] : memref<36x512xf32, #tpu.memory_space<vmem>>, vector<4x512xf32>
    tpu.vector_store %arg5[%c28, %c0_35], %76 {strides = array<i32>} : memref<36x512xf32, #tpu.memory_space<vmem>>, vector<4x512xf32>,
    %c0_36 = arith.constant 0 : index
    %c145 = arith.constant 145 : index
    %78 = vector.load %arg4[%c0_36, %c145] : memref<4x768xf32, #tpu.memory_space<vmem>>, vector<4x512xf32>
    %c240_i32_37 = arith.constant 240 : i32
    %79 = vector.broadcast %c240_i32_37 : i32 to vector<1x512xi32>
    %80 = arith.cmpi slt, %8, %79 : vector<1x512xi32>
    %c14_i32_38 = arith.constant 14 : i32
    %81 = vector.broadcast %c14_i32_38 : i32 to vector<1x512xi32>
    %82 = arith.cmpi sle, %10, %81 : vector<1x512xi32>
    %83 = arith.andi %80, %82 : vector<1x512xi1>
    %cst_39 = arith.constant 0.000000e+00 : f32
    %84 = vector.shape_cast %83 : vector<1x512xi1> to vector<1x512xi1>
    %85 = vector.broadcast %84 : vector<1x512xi1> to vector<4x512xi1>
    %86 = vector.broadcast %cst_39 : f32 to vector<4x512xf32>
    %87 = arith.select %85, %78, %86 : vector<4x512xi1>, vector<4x512xf32>
    %c32 = arith.constant 32 : index
    %c0_40 = arith.constant 0 : index
    %88 = vector.load %arg5[%c32, %c0_40] : memref<36x512xf32, #tpu.memory_space<vmem>>, vector<4x512xf32>
    tpu.vector_store %arg5[%c32, %c0_40], %87 {strides = array<i32>} : memref<36x512xf32, #tpu.memory_space<vmem>>, vector<4x512xf32>,
    %c0_41 = arith.constant 0 : index
    %c0_42 = arith.constant 0 : index
    %89 = vector.load %arg2[%c0_41, %c0_42] : memref<8x36xf32, #tpu.memory_space<vmem>>, vector<8x36xf32>
    %c0_43 = arith.constant 0 : index
    %c0_44 = arith.constant 0 : index
    %90 = vector.load %arg5[%c0_43, %c0_44] : memref<36x512xf32, #tpu.memory_space<vmem>>, vector<36x512xf32>
    %cst_45 = arith.constant dense<0.000000e+00> : vector<8x512xf32>
    %91 = tpu.matmul %89, %90, %cst_45 {dimension_numbers = #tpu.dot_dimension_numbers<[1], [0], [0], [1], [0, 0, 1, 1], [], []>} : vector<8x36xf32>, vector<36x512xf32>, vector<8x512xf32> -> vector<8x512xf32>
    %c0_46 = arith.constant 0 : index
    %c0_47 = arith.constant 0 : index
    %92 = vector.load %arg6[%c0_46, %c0_47] : memref<8x512xf32, #tpu.memory_space<vmem>>, vector<8x512xf32>
    tpu.vector_store %arg6[%c0_46, %c0_47], %91 {strides = array<i32>} : memref<8x512xf32, #tpu.memory_space<vmem>>, vector<8x512xf32>,
    %c0_48 = arith.constant 0 : index
    %c0_49 = arith.constant 0 : index
    %93 = vector.load %arg6[%c0_48, %c0_49] : memref<8x512xf32, #tpu.memory_space<vmem>>, vector<8x512xf32>
    %94 = vector.extract_strided_slice %93 {offsets = [0, 0], sizes = [8, 256], strides = [1, 1]} : vector<8x512xf32> to vector<8x256xf32>
    %cst_50 = arith.constant dense<0.000000e+00> : vector<8xf32>
    %95 = vector.multi_reduction <add>, %94, %cst_50 [1] : vector<8x256xf32> to vector<8xf32>
    %96 = vector.shape_cast %95 : vector<8xf32> to vector<8x1xf32>
    %cst_51 = arith.constant 3.906250e-03 : f32
    %97 = vector.broadcast %cst_51 : f32 to vector<8x1xf32>
    %98 = arith.mulf %96, %97 : vector<8x1xf32>
    %99 = vector.broadcast %98 : vector<8x1xf32> to vector<8x256xf32>
    %100 = arith.subf %94, %99 : vector<8x256xf32>
    %101 = arith.mulf %100, %100 : vector<8x256xf32>
    %cst_52 = arith.constant dense<0.000000e+00> : vector<8xf32>
    %102 = vector.multi_reduction <add>, %101, %cst_52 [1] : vector<8x256xf32> to vector<8xf32>
    %103 = vector.shape_cast %102 : vector<8xf32> to vector<8x1xf32>
    %cst_53 = arith.constant 3.906250e-03 : f32
    %104 = vector.broadcast %cst_53 : f32 to vector<8x1xf32>
    %105 = arith.mulf %103, %104 : vector<8x1xf32>
    %cst_54 = arith.constant 9.99999974E-6 : f32
    %106 = vector.broadcast %cst_54 : f32 to vector<8x1xf32>
    %107 = arith.addf %105, %106 : vector<8x1xf32>
    %108 = math.rsqrt %107 : vector<8x1xf32>
    %109 = vector.broadcast %108 : vector<8x1xf32> to vector<8x256xf32>
    %110 = arith.mulf %100, %109 : vector<8x256xf32>
    %cst_55 = arith.constant 0.000000e+00 : f32
    %111 = vector.broadcast %cst_55 : f32 to vector<8x256xf32>
    %112 = arith.maximumf %110, %111 : vector<8x256xf32>
    %c0_56 = arith.constant 0 : index
    %c0_57 = arith.constant 0 : index
    %c0_58 = arith.constant 0 : index
    %113 = vector.load %arg3[%c0_56, %c0_57, %c0_58] : memref<2x8x256xf32, #tpu.memory_space<vmem>>, vector<1x8x256xf32>
    %114 = vector.shape_cast %113 : vector<1x8x256xf32> to vector<8x256xf32>
    %115 = vector.shape_cast %112 : vector<8x256xf32> to vector<1x8x256xf32>
    tpu.vector_store %arg3[%c0_56, %c0_57, %c0_58], %115 {strides = array<i32>} : memref<2x8x256xf32, #tpu.memory_space<vmem>>, vector<1x8x256xf32>,
    %116 = vector.extract_strided_slice %93 {offsets = [0, 256], sizes = [8, 256], strides = [1, 1]} : vector<8x512xf32> to vector<8x256xf32>
    %cst_59 = arith.constant dense<0.000000e+00> : vector<8xf32>
    %117 = vector.multi_reduction <add>, %116, %cst_59 [1] : vector<8x256xf32> to vector<8xf32>
    %118 = vector.shape_cast %117 : vector<8xf32> to vector<8x1xf32>
    %cst_60 = arith.constant 3.906250e-03 : f32
    %119 = vector.broadcast %cst_60 : f32 to vector<8x1xf32>
    %120 = arith.mulf %118, %119 : vector<8x1xf32>
    %121 = vector.broadcast %120 : vector<8x1xf32> to vector<8x256xf32>
    %122 = arith.subf %116, %121 : vector<8x256xf32>
    %123 = arith.mulf %122, %122 : vector<8x256xf32>
    %cst_61 = arith.constant dense<0.000000e+00> : vector<8xf32>
    %124 = vector.multi_reduction <add>, %123, %cst_61 [1] : vector<8x256xf32> to vector<8xf32>
    %125 = vector.shape_cast %124 : vector<8xf32> to vector<8x1xf32>
    %cst_62 = arith.constant 3.906250e-03 : f32
    %126 = vector.broadcast %cst_62 : f32 to vector<8x1xf32>
    %127 = arith.mulf %125, %126 : vector<8x1xf32>
    %cst_63 = arith.constant 9.99999974E-6 : f32
    %128 = vector.broadcast %cst_63 : f32 to vector<8x1xf32>
    %129 = arith.addf %127, %128 : vector<8x1xf32>
    %130 = math.rsqrt %129 : vector<8x1xf32>
    %131 = vector.broadcast %130 : vector<8x1xf32> to vector<8x256xf32>
    %132 = arith.mulf %122, %131 : vector<8x256xf32>
    %cst_64 = arith.constant 0.000000e+00 : f32
    %133 = vector.broadcast %cst_64 : f32 to vector<8x256xf32>
    %134 = arith.maximumf %132, %133 : vector<8x256xf32>
    %c1_65 = arith.constant 1 : index
    %c0_66 = arith.constant 0 : index
    %c0_67 = arith.constant 0 : index
    %135 = vector.load %arg3[%c1_65, %c0_66, %c0_67] : memref<2x8x256xf32, #tpu.memory_space<vmem>>, vector<1x8x256xf32>
    %136 = vector.shape_cast %135 : vector<1x8x256xf32> to vector<8x256xf32>
    %137 = vector.shape_cast %134 : vector<8x256xf32> to vector<1x8x256xf32>
    tpu.vector_store %arg3[%c1_65, %c0_66, %c0_67], %137 {strides = array<i32>} : memref<2x8x256xf32, #tpu.memory_space<vmem>>, vector<1x8x256xf32>,
    return
  }
  func.func @transform_0(%arg0: i32) -> (i32, i32, i32) {
    %c0_i32 = arith.constant 0 : i32
    %c0_i32_0 = arith.constant 0 : i32
    %c0_i32_1 = arith.constant 0 : i32
    return %arg0, %c0_i32, %c0_i32_0 : i32, i32, i32
  }
  func.func @transform_1(%arg0: i32) -> (i32, i32) {
    %c0_i32 = arith.constant 0 : i32
    %c0_i32_0 = arith.constant 0 : i32
    %c0_i32_1 = arith.constant 0 : i32
    return %c0_i32, %c0_i32_0 : i32, i32
  }
  func.func @transform_2(%arg0: i32) -> (i32, i32, i32) {
    %c0_i32 = arith.constant 0 : i32
    %c0_i32_0 = arith.constant 0 : i32
    %c0_i32_1 = arith.constant 0 : i32
    return %arg0, %c0_i32, %c0_i32_0 : i32, i32, i32
  }
}

</mosaic_0001>

<bundles_post_ra>
// kernel: tpu_custom_call.1
= control target key start
LH: loop header
LB: loop body
LE: loop exit
PB: predicated region body
PF: predicated region fallthrough
CT: control target
= control target key end

     0   :  { %7 = vsyncpa [#allocation6], 0  ;;  %s1145_s0 = inlined_call_operand.hbm [shape: f32[2,4,256], index: 0, kind: input, shape index: {}]   ;;  %s1146_s1 = inlined_call_operand.hbm [shape: f32[8,36], index: 1, kind: input, shape index: {}]   ;;  %s1147_s2 = inlined_call_operand.hbm [shape: f32[2,8,256], index: 2, kind: output, shape index: {}]  }
   0x1   :  { %8 = vsyncpa [#allocation9], 0 }
   0x2   :  { %9 = vsyncpa [#allocation7], 0  ;;  %s14_s11 = sshll.u32 %s1145_s0, 4  ;;  %s876_s12 = smov [#allocation5]   ;;  %s15_s11 = int_to_ptr.hbm [resolvable:$true] %s14_s11 }
   0x3   :  { %s16_s13 = sshll.u32 %s876_s12, 4  ;;  %s28_s16 = sshll.u32 %s1146_s1, 4  ;;  %s17_s13 = int_to_ptr.vmem [resolvable:$true] %s16_s13  ;;  %s29_s16 = int_to_ptr.hbm [resolvable:$true] %s28_s16 }
   0x4   :  { %s877_s17 = smov 128   ;;  %s878_s18 = smov 8  }
   0x5   :  { %22 = dma.hbm_to_vmem [thread:$0]  %s15_s11, 256, %s17_s13, [#allocation6], %s877_s17, %s877_s17, %s878_s18  }
   0x6   :  { %s879_s19 = smov [#allocation8]  }
   0x7   :  { %s30_s20 = sshll.u32 %s879_s19, 4  ;;  %s31_s20 = int_to_ptr.vmem [resolvable:$true] %s30_s20 }
   0x8   :  { %33 = dma.hbm_to_vmem [thread:$0]  %s29_s16, 128, %s31_s20, [#allocation9]  }
   0x9   :  { %870 = dma.done.wait [#allocation6], 256  }
   0xa   :  { %871 = vsyncadd [#allocation6], 4294967040 }
   0xb   :  { %872 = dma.done.wait [#allocation9], 128  }
   0xc   :  { %873 = vsyncadd [#allocation9], 4294967168  ;;  %v911_v0 = vld [vmem:[#allocation5 + $0x8] sm:$0xff]  ;;  %v913_v1 = vld [vmem:[#allocation5] sm:$0xff]  ;;  %s880_s0 = smov 17   ;;  %s881_s1 = smov 16   ;;  %v47_v57 = vlaneseq }
   0xd   :  { %46 = vst [vmem:[#allocation2 + $0xc] sm:$0xff] %v911_v0  ;;  %s882_s21 = smov 15   ;;  %v329_v23 = vld [vmem:[#allocation2 + $0x14] sm:$0xf]  ;;  %s883_s22 = smov 1   ;;  %vm1148_vm2 = vcmask 138240  }
   0xe   :  { %43 = vst [vmem:[#allocation2 + $0x4] sm:$0xff] %v913_v1  ;;  %v392_v31 = vld [vmem:[#allocation2 + $0x14] sm:$0xf]  ;;  %s884_s23 = smov 127   ;;  %s885_s24 = smov 113   ;;  %v949_v58 = vand.u32 127, %v47_v57 }
   0xf   :  { %v451_v35 = vld [vmem:[#allocation2 + $0x14] sm:$0xf]  ;;  %s886_s25 = smov 112   ;;  %s887_s26 = smov 111   ;;  %vm157_vm5 = vcmask 130048   ;;  %vm228_vm7 = vcmask 121856  }
  0x10   :  { %v514_v41 = vld [vmem:[#allocation2 + $0x14] sm:$0xf]  ;;  %v50_v59 = vadd.s32 256, %v949_v58  ;;  %v955_v61 = vadd.s32 384, %v949_v58  ;;  %vm279_vm10 = vcmask 7168   ;;  %vm361_vm13 = vcmask 1039360  }
  0x11   :  { %s888_s27 = smov [#allocation10]   ;;  %s758_s3 = sshll.u32 %s1147_s2, 4  ;;  %s759_s3 = int_to_ptr.hbm [resolvable:$true] %s758_s3 }
  0x12   :  { %v54_v62 = vand.u32 255, %v50_v59  ;;  %v55_v63 = vand.u32 255, %v955_v61  ;;  %s756_s28 = sshll.u32 %s888_s27, 4  ;;  %s889_s4 = smov 256   ;;  %s757_s28 = int_to_ptr.vmem [resolvable:$true] %s756_s28 }
  0x14   :  { %v62_v2 = vld [vmem:[#allocation2 + $0x10] sm:$0xf]  ;;  %vm972_vm0 = vcmp.ge.s32.totalorder %v54_v62, 16 }
  0x15   :  { %90 = vst [vmem:[#allocation1 + $0x20] ss:$2 sm:$0xff] %v62_v2  ;;  %v61_v3 = vld [vmem:[#allocation2 + $0x8] sm:$0xff]  ;;  %v60_v4 = vld [vmem:[#allocation2] sm:$0xff]  ;;  %v125_v6 = vld [vmem:[#allocation2 + $0x10] sm:$0xf] }
  0x16   :  { %88 = vst [vmem:[#allocation1 + $0x10] ss:$2 sm:$0xff] %v61_v3  ;;  %v188_v11 = vld [vmem:[#allocation2 + $0x10] sm:$0xf]  ;;  %v968_v2 = vand.u32 15, %v55_v63 }
  0x17   :  { %86 = vst [vmem:[#allocation1] ss:$2 sm:$0xff] %v60_v4  ;;  %v247_v17 = vld [vmem:[#allocation2 + $0x10] sm:$0xf] }
  0x18   :  { %vm70_vm3 = vcmp.ge.s32.totalorder %v968_v2, 1  ;;  %vm192_vm9 = vcmp.le.s32.totalorder %v968_v2, 14 }
  0x1c   :  { %v95_v5 = vld.sshfl [vmem:[#allocation1 + $0x20] sm:$0xff pattern:$0x75316420] }
  0x1d   :  { %104 = vrot.lane.b32.xlu0 %v95_v5, %s880_s0  ;;  %v94_v7 = vld.sshfl [vmem:[#allocation1 + $0x18] sm:$0xff pattern:$0x75316420]  ;;  %v93_v8 = vld.sshfl [vmem:[#allocation1 + $0x10] sm:$0xff pattern:$0x75316420] }
  0x1e   :  { %102 = vrot.lane.b32.xlu2 %v94_v7, %s880_s0  ;;  %100 = vrot.lane.b32.xlu1 %v93_v8, %s880_s0  ;;  %139 = vst [vmem:[#allocation1 + $0x10] ss:$2 sm:$0xff] %v61_v3  ;;  %v920_v9 = vld.sshfl [vmem:[#allocation1] sm:$0xff pattern:$0x75316420] }
  0x1f   :  { %141 = vst [vmem:[#allocation1 + $0x20] ss:$2 sm:$0xff] %v125_v6  ;;  %v922_v10 = vld.sshfl [vmem:[#allocation1 + $0x8] sm:$0xff pattern:$0x75316420] }
  0x20   :  { %137 = vst [vmem:[#allocation1] ss:$2 sm:$0xff] %v60_v4 }
  0x25   :  { %v145_v12 = vld.sshfl [vmem:[#allocation1 + $0x18] sm:$0xff pattern:$0x75316420]  ;;  %v144_v13 = vld.sshfl [vmem:[#allocation1 + $0x10] sm:$0xff pattern:$0x75316420] }
  0x26   :  { %v146_v14 = vld.sshfl [vmem:[#allocation1 + $0x20] sm:$0xff pattern:$0x75316420]  ;;  %153 = vrot.lane.b32.xlu1 %v145_v12, %s881_s1  ;;  %151 = vrot.lane.b32.xlu0 %v144_v13, %s881_s1  ;;  %210 = vst [vmem:[#allocation1 + $0x10] ss:$2 sm:$0xff] %v61_v3 }
  0x27   :  { %212 = vst [vmem:[#allocation1 + $0x20] ss:$2 sm:$0xff] %v188_v11  ;;  %155 = vrot.lane.b32.xlu2 %v146_v14, %s881_s1  ;;  %v142_v15 = vld.sshfl [vmem:[#allocation1] sm:$0xff pattern:$0x75316420] }
  0x28   :  { %v927_v16 = vld.sshfl [vmem:[#allocation1 + $0x8] sm:$0xff pattern:$0x75316420] }
  0x29   :  { %208 = vst [vmem:[#allocation1] ss:$2 sm:$0xff] %v60_v4 }
  0x2d   :  { %v216_v18 = vld.sshfl [vmem:[#allocation1 + $0x18] sm:$0xff pattern:$0x75316420]  ;;  %v215_v19 = vld.sshfl [vmem:[#allocation1 + $0x10] sm:$0xff pattern:$0x75316420] }
  0x2e   :  { %v217_v20 = vld.sshfl [vmem:[#allocation1 + $0x20] sm:$0xff pattern:$0x75316420]  ;;  %224 = vrot.lane.b32.xlu0 %v216_v18, %s882_s21  ;;  %261 = vst [vmem:[#allocation1 + $0x10] ss:$2 sm:$0xff] %v61_v3  ;;  %147 = vrot.lane.b32.xlu1 %v142_v15, %s881_s1 }
  0x2f   :  { %263 = vst [vmem:[#allocation1 + $0x20] ss:$2 sm:$0xff] %v247_v17  ;;  %222 = vrot.lane.b32.xlu2 %v215_v19, %s882_s21 }
  0x30   :  { %v932_v21 = vld.sshfl [vmem:[#allocation1] sm:$0xff pattern:$0x75316420]  ;;  %v934_v22 = vld.sshfl [vmem:[#allocation1 + $0x8] sm:$0xff pattern:$0x75316420] }
  0x31   :  { %259 = vst [vmem:[#allocation1] ss:$2 sm:$0xff] %v60_v4 }
  0x35   :  { %v266_v24 = vld.sshfl [vmem:[#allocation1 + $0x10] sm:$0xff pattern:$0x75316420]  ;;  %v267_v25 = vld.sshfl [vmem:[#allocation1 + $0x18] sm:$0xff pattern:$0x75316420] }
  0x36   :  { %v268_v26 = vld.sshfl [vmem:[#allocation1 + $0x20] sm:$0xff pattern:$0x75316420]  ;;  %273 = vrot.lane.b32.xlu0 %v266_v24, %s883_s22  ;;  %226 = vrot.lane.b32.xlu1 %v217_v20, %s882_s21  ;;  %314 = vst [vmem:[#allocation1 + $0x10] ss:$2 sm:$0xff] %v911_v0  ;;  %v49_v24 = vadd.s32 128, %v949_v58 }
  0x37   :  { %345 = vst [vmem:[#allocation1 + $0x20] ss:$2 sm:$0xff] %v329_v23  ;;  %277 = vrot.lane.b32.xlu2 %v268_v26, %s883_s22 }
  0x38   :  { %v265_v27 = vld.sshfl [vmem:[#allocation1 + $0x8] sm:$0xff pattern:$0x75316420]  ;;  %v264_v28 = vld.sshfl [vmem:[#allocation1] sm:$0xff pattern:$0x75316420] }
  0x39   :  { %312 = vst [vmem:[#allocation1] ss:$2 sm:$0xff] %v913_v1  ;;  %v53_v26 = vand.u32 255, %v49_v24 }
  0x3d   :  { %v317_v29 = vld.sshfl [vmem:[#allocation1 + $0x10] sm:$0xff pattern:$0x75316420]  ;;  %v318_v30 = vld.sshfl [vmem:[#allocation1 + $0x18] sm:$0xff pattern:$0x75316420] }
  0x3e   :  { %275 = vrot.lane.b32.xlu1 %v267_v25, %s883_s22  ;;  %325 = vst [vmem:[#allocation3 + $0x28] sm:$0xf] %v317_v29  ;;  %271 = vrot.lane.b32.xlu0 %v265_v27, %s883_s22  ;;  %v350_v33 = vld.sshfl [vmem:[#allocation1 + $0x20] sm:$0xff pattern:$0x75316420]  ;;  %v52_v25 = vand.u32 255, %v949_v58 }
  0x3f   :  { %326 = vst [vmem:[#allocation3 + $0x40] sm:$0xf] %v318_v30  ;;  %269 = vrot.lane.b32.xlu2 %v264_v28, %s883_s22 }
  0x40   :  { %v315_v32 = vld.sshfl [vmem:[#allocation1] sm:$0xff pattern:$0x75316420]  ;;  %v316_v34 = vld.sshfl [vmem:[#allocation1 + $0x8] sm:$0xff pattern:$0x75316420] }
  0x41   :  { %323 = vst [vmem:[#allocation3 + $0x8] sm:$0xf] %v315_v32  ;;  %v1015_v32 = vand.u32 15, %v52_v25 }
  0x42   :  { %324 = vst [vmem:[#allocation3 + $0x88] sm:$0xf] %v316_v34 }
  0x43   :  { %343 = vst [vmem:[#allocation1 + $0x10] ss:$2 sm:$0xff] %v911_v0  ;;  %vm67_vm11 = vcmp.ge.s32.totalorder %v1015_v32, 1  ;;  %vm189_vm15 = vcmp.le.s32.totalorder %v1015_v32, 14 }
  0x44   :  { %416 = vst [vmem:[#allocation1 + $0x20] ss:$2 sm:$0xff] %v392_v31 }
  0x45   :  { %341 = vst [vmem:[#allocation1] ss:$2 sm:$0xff] %v913_v1 }
  0x47   :  { %359 = vrot.lane.b32.xlu2 %v350_v33, %s884_s23  ;;  %v1017_v33 = vand.u32 15, %v53_v26 }
  0x49   :  { %vm68_vm12 = vcmp.ge.s32.totalorder %v1017_v33, 1  ;;  %vm190_vm14 = vcmp.le.s32.totalorder %v1017_v33, 14 }
  0x4a   :  { %v349_v36 = vld.sshfl [vmem:[#allocation1 + $0x18] sm:$0xff pattern:$0x75316420]  ;;  %v348_v37 = vld.sshfl [vmem:[#allocation1 + $0x10] sm:$0xff pattern:$0x75316420] }
  0x4b   :  { %357 = vrot.lane.b32.xlu1 %v349_v36, %s884_s23  ;;  %355 = vrot.lane.b32.xlu0 %v348_v37, %s884_s23  ;;  %v421_v38 = vld.sshfl [vmem:[#allocation1 + $0x20] sm:$0xff pattern:$0x75316420]  ;;  %414 = vst [vmem:[#allocation1 + $0x10] ss:$2 sm:$0xff] %v911_v0 }
  0x4c   :  { %467 = vst [vmem:[#allocation1 + $0x20] ss:$2 sm:$0xff] %v451_v35  ;;  %v346_v39 = vld.sshfl [vmem:[#allocation1] sm:$0xff pattern:$0x75316420] }
  0x4d   :  { %v347_v40 = vld.sshfl [vmem:[#allocation1 + $0x8] sm:$0xff pattern:$0x75316420] }
  0x4e   :  { %412 = vst [vmem:[#allocation1] ss:$2 sm:$0xff] %v913_v1 }
  0x4f   :  { %430 = vrot.lane.b32.xlu2 %v421_v38, %s885_s24 }
  0x52   :  { %v419_v42 = vld.sshfl [vmem:[#allocation1 + $0x10] sm:$0xff pattern:$0x75316420]  ;;  %v420_v43 = vld.sshfl [vmem:[#allocation1 + $0x18] sm:$0xff pattern:$0x75316420] }
  0x53   :  { %v472_v44 = vld.sshfl [vmem:[#allocation1 + $0x20] sm:$0xff pattern:$0x75316420]  ;;  %351 = vrot.lane.b32.xlu1 %v346_v39, %s884_s23  ;;  %465 = vst [vmem:[#allocation1 + $0x10] ss:$2 sm:$0xff] %v911_v0 }
  0x54   :  { %534 = vst [vmem:[#allocation1 + $0x20] ss:$2 sm:$0xff] %v514_v41  ;;  %481 = vrot.lane.b32.xlu0 %v472_v44, %s886_s25 }
  0x55   :  { %v418_v45 = vld.sshfl [vmem:[#allocation1 + $0x8] sm:$0xff pattern:$0x75316420]  ;;  %v417_v46 = vld.sshfl [vmem:[#allocation1] sm:$0xff pattern:$0x75316420] }
  0x56   :  { %463 = vst [vmem:[#allocation1] ss:$2 sm:$0xff] %v913_v1 }
  0x57   :  { %353 = vrot.lane.b32.xlu2 %v347_v40, %s884_s23 }
  0x5a   :  { %v471_v47 = vld.sshfl [vmem:[#allocation1 + $0x18] sm:$0xff pattern:$0x75316420]  ;;  %v470_v48 = vld.sshfl [vmem:[#allocation1 + $0x10] sm:$0xff pattern:$0x75316420] }
  0x5b   :  { %428 = vrot.lane.b32.xlu1 %v420_v43, %s885_s24  ;;  %532 = vst [vmem:[#allocation1 + $0x10] ss:$2 sm:$0xff] %v911_v0  ;;  %v539_v49 = vld.sshfl [vmem:[#allocation1 + $0x20] sm:$0xff pattern:$0x75316420]  ;;  %v962_v0 = vand.u32 15, %v54_v62 }
  0x5c   :  { %426 = vrot.lane.b32.xlu0 %v419_v42, %s885_s24 }
  0x5d   :  { %v469_v50 = vld.sshfl [vmem:[#allocation1 + $0x8] sm:$0xff pattern:$0x75316420]  ;;  %v468_v51 = vld.sshfl [vmem:[#allocation1] sm:$0xff pattern:$0x75316420] }
  0x5e   :  { %530 = vst [vmem:[#allocation1] ss:$2 sm:$0xff] %v913_v1  ;;  %vm69_vm1 = vcmp.ge.s32.totalorder %v962_v0, 1  ;;  %vm191_vm6 = vcmp.le.s32.totalorder %v962_v0, 14 }
  0x5f   :  { %548 = vrot.lane.b32.xlu2 %v539_v49, %s887_s26  ;;  %vm73_vm4 = vmand %vm972_vm0, %vm69_vm1 }
  0x60   :  { %vm195_vm8 = vmand %vm972_vm0, %vm191_vm6 }
  0x62   :  { %v537_v52 = vld.sshfl [vmem:[#allocation1 + $0x10] sm:$0xff pattern:$0x75316420]  ;;  %v538_v53 = vld.sshfl [vmem:[#allocation1 + $0x18] sm:$0xff pattern:$0x75316420] }
  0x63   :  { %424 = vrot.lane.b32.xlu1 %v418_v45, %s885_s24 }
  0x64   :  { %422 = vrot.lane.b32.xlu0 %v417_v46, %s885_s24 }
  0x65   :  { %v536_v54 = vld.sshfl [vmem:[#allocation1 + $0x8] sm:$0xff pattern:$0x75316420]  ;;  %v535_v56 = vld.sshfl [vmem:[#allocation1] sm:$0xff pattern:$0x75316420] }
  0x67   :  { %477 = vrot.lane.b32.xlu2 %v470_v48, %s886_s25 }
  0x6b   :  { %544 = vrot.lane.b32.xlu1 %v537_v52, %s887_s26 }
  0x6c   :  { %479 = vrot.lane.b32.xlu0 %v471_v47, %s886_s25 }
  0x6f   :  { %475 = vrot.lane.b32.xlu2 %v469_v50, %s886_s25 }
  0x73   :  { %546 = vrot.lane.b32.xlu1 %v538_v53, %s887_s26 }
  0x74   :  { %473 = vrot.lane.b32.xlu0 %v468_v51, %s886_s25 }
  0x77   :  { %149 = vrot.lane.b32.xlu2 %v927_v16, %s881_s1 }
  0x78   :  { %v103_v55 = vpop.permute.xlu2 %102 }
  0x7b   :  { %542 = vrot.lane.b32.xlu1 %v536_v54, %s887_s26 }
  0x7c   :  { %540 = vrot.lane.b32.xlu0 %v535_v56, %s887_s26 }
  0x7f   :  { %96 = vrot.lane.b32.xlu2 %v920_v9, %s880_s0 }
  0x81   :  { %v156_v60 = vpop.permute.xlu2 %155 }
  0x83   :  { %220 = vrot.lane.b32.xlu1 %v934_v22, %s882_s21 }
  0x84   :  { %218 = vrot.lane.b32.xlu0 %v932_v21, %s882_s21 }
  0x89   :  { %v964_v1 = vpop.permute.xlu2 %222 }
  0x8c   :  { %98 = vrot.lane.b32.xlu0 %v922_v10, %s880_s0 }
  0x8f   :  { %v105_v4 = vpop.permute.xlu0 %104 }
  0x90   :  { %v110_v5 = vsel %vm1148_vm2, %v103_v55, %v105_v4  ;;  %v983_v6 = vpop.permute.xlu1 %100 }
  0x91   :  { %v118_v7 = vsel %vm70_vm3, %v110_v5, 0.0  ;;  %v109_v8 = vsel %vm1148_vm2, %v983_v6, %v103_v55  ;;  %v278_v9 = vpop.permute.xlu2 %277  ;;  %vm1069_vm2 = vcmp.ge.s32.totalorder %v52_v25, 16 }
  0x92   :  { %122 = vst [vmem:[#allocation3 + $0x18] sm:$0xf] %v118_v7  ;;  %v117_v10 = vsel %vm73_vm4, %v109_v8, 0.0  ;;  %vm1045_vm4 = vcmp.lt.s32.totalorder %v53_v26, 240 }
  0x93   :  { %121 = vst [vmem:[#allocation3 + $0x50] sm:$0xf] %v117_v10 }
  0x98   :  { %v154_v11 = vpop.permute.xlu1 %153  ;;  %v989_v12 = vpop.permute.xlu0 %151 }
  0x99   :  { %v161_v13 = vsel %vm157_vm5, %v154_v11, %v156_v60  ;;  %v160_v14 = vsel %vm157_vm5, %v989_v12, %v154_v11  ;;  %v270_v15 = vpop.permute.xlu2 %269 }
  0x9a   :  { %v177_v16 = vrot.slane %v161_v13, 4  ;;  %v168_v17 = vsel %vm972_vm0, %v160_v14, 0.0  ;;  %vm483_vm0 = vcmask 916480  }
  0x9b   :  { %v176_v18 = vrot.slane %v168_v17, 4 }
  0x9c   :  { %185 = vst [vmem:[#allocation3 + $0x18] sm:$0xf0] %v177_v16 }
  0x9d   :  { %184 = vst [vmem:[#allocation3 + $0x50] sm:$0xf0] %v176_v18 }
  0xa0   :  { %v225_v19 = vpop.permute.xlu0 %224  ;;  %v1001_v20 = vpop.permute.xlu1 %147 }
  0xa1   :  { %v231_v21 = vsel %vm228_vm7, %v964_v1, %v225_v19  ;;  %v360_v22 = vpop.permute.xlu2 %359 }
  0xa2   :  { %v239_v23 = vsel %vm195_vm8, %v231_v21, 0.0  ;;  %vm1051_vm8 = vcmp.lt.s32.totalorder %v55_v63, 240 }
  0xa3   :  { %243 = vst [vmem:[#allocation3 + $0x78] sm:$0xf] %v239_v23 }
  0xa4   :  { %v570_v11 = vld [vmem:[#allocation3 + $0x50] sm:$0xff] }
  0xa8   :  { %v274_v27 = vpop.permute.xlu0 %273  ;;  %v227_v28 = vpop.permute.xlu1 %226 }
  0xa9   :  { %v232_v29 = vsel %vm228_vm7, %v225_v19, %v227_v28  ;;  %v1009_v30 = vpop.permute.xlu2 %430 }
  0xaa   :  { %v240_v31 = vsel %vm192_vm9, %v232_v29, 0.0 }
  0xab   :  { %244 = vst [vmem:[#allocation3 + $0x80] sm:$0xf] %v240_v31 }
  0xb0   :  { %v276_v34 = vpop.permute.xlu1 %275  ;;  %v272_v35 = vpop.permute.xlu0 %271 }
  0xb1   :  { %v282_v36 = vsel %vm279_vm10, %v274_v27, %v276_v34  ;;  %v283_v37 = vsel %vm279_vm10, %v276_v34, %v278_v9  ;;  %v280_v38 = vsel %vm279_vm10, %v270_v15, %v272_v35  ;;  %v281_v39 = vsel %vm279_vm10, %v272_v35, %v274_v27  ;;  %v354_v40 = vpop.permute.xlu2 %353 }
  0xb2   :  { %v290_v41 = vsel %vm69_vm1, %v282_v36, 0.0  ;;  %v291_v42 = vsel %vm70_vm3, %v283_v37, 0.0  ;;  %v288_v43 = vsel %vm67_vm11, %v280_v38, 0.0  ;;  %v289_v44 = vsel %vm68_vm12, %v281_v39, 0.0 }
  0xb3   :  { %v298_v45 = vrot.slane %v290_v41, 4  ;;  %v299_v46 = vrot.slane %v291_v42, 4  ;;  %v296_v47 = vrot.slane %v288_v43, 4  ;;  %v297_v48 = vrot.slane %v289_v44, 4 }
  0xb4   :  { %vm432_vm10 = vcmask 924672  }
  0xb5   :  { %306 = vst [vmem:[#allocation3 + $0x78] sm:$0xf0] %v298_v45 }
  0xb6   :  { %307 = vst [vmem:[#allocation3 + $0x80] sm:$0xf0] %v299_v46 }
  0xb7   :  { %304 = vst [vmem:[#allocation3 + $0x30] sm:$0xf0] %v296_v47 }
  0xb8   :  { %305 = vst [vmem:[#allocation3 + $0x68] sm:$0xf0] %v297_v48 }
  0xb9   :  { %v1029_v49 = vpop.permute.xlu2 %548 }
  0xbd   :  { %v358_v50 = vpop.permute.xlu1 %357  ;;  %v356_v51 = vpop.permute.xlu0 %355 }
  0xbe   :  { %v365_v52 = vsel %vm361_vm13, %v358_v50, %v360_v22  ;;  %v363_v53 = vsel %vm361_vm13, %v354_v40, %v356_v51  ;;  %v364_v54 = vsel %vm361_vm13, %v356_v51, %v358_v50 }
  0xbf   :  { %v373_v55 = vsel %vm192_vm9, %v365_v52, 0.0  ;;  %v371_v56 = vsel %vm190_vm14, %v363_v53, 0.0  ;;  %v372_v57 = vsel %vm191_vm6, %v364_v54, 0.0 }
  0xc0   :  { %v381_v59 = vrot.slane %v373_v55, 4  ;;  %v379_v60 = vrot.slane %v371_v56, 4  ;;  %v380_v62 = vrot.slane %v372_v57, 4 }
  0xc1   :  { %v478_v3 = vpop.permute.xlu2 %477 }
  0xc2   :  { %389 = vst [vmem:[#allocation3 + $0x40] sm:$0xf0] %v381_v59 }
  0xc3   :  { %387 = vst [vmem:[#allocation3 + $0x88] sm:$0xf0] %v379_v60 }
  0xc4   :  { %388 = vst [vmem:[#allocation3 + $0x28] sm:$0xf0] %v380_v62 }
  0xc5   :  { %v352_v4 = vpop.permute.xlu1 %351 }
  0xc6   :  { %v482_v5 = vpop.permute.xlu0 %481  ;;  %v362_v7 = vsel %vm361_vm13, %v352_v4, %v354_v40  ;;  %vm400_vm13 = vmand %vm1051_vm8, %vm70_vm3  ;;  %vm550_vm3 = vcmask 908288  }
  0xc7   :  { %v370_v8 = vsel %vm189_vm15, %v362_v7, 0.0  ;;  %v575_v7 = vld [vmem:[#allocation3 + $0x80] sm:$0xff] }
  0xc8   :  { %v378_v9 = vrot.slane %v370_v8, 4 }
  0xc9   :  { %v476_v13 = vpop.permute.xlu2 %475  ;;  %v579_v59 = vld [vmem:[#allocation3 + $0x40] sm:$0xff] }
  0xca   :  { %386 = vst [vmem:[#allocation3 + $0x8] sm:$0xf0] %v378_v9  ;;  %v485_v14 = vsel %vm483_vm0, %v476_v13, %v478_v3 }
  0xcb   :  { %v493_v15 = vsel %vm1045_vm4, %v485_v14, 0.0  ;;  %v578_v57 = vld [vmem:[#allocation3 + $0x28] sm:$0xff] }
  0xcc   :  { %v501_v16 = vrot.slane %v493_v15, 4 }
  0xcd   :  { %v429_v17 = vpop.permute.xlu1 %428 }
  0xce   :  { %v427_v61 = vpop.permute.xlu0 %426  ;;  %v436_v63 = vsel %vm432_vm10, %v429_v17, %v1009_v30  ;;  %509 = vst [vmem:[#allocation3 + $0x10] sm:$0xf0] %v501_v16 }
  0xcf   :  { %v435_v18 = vsel %vm432_vm10, %v427_v61, %v429_v17  ;;  %v444_v19 = vsel %vm400_vm13, %v436_v63, 0.0  ;;  %v577_v63 = vld [vmem:[#allocation3 + $0x88] sm:$0xff] }
  0xd0   :  { %v443_v21 = vsel %vm69_vm1, %v435_v18, 0.0  ;;  %448 = vst [vmem:[#allocation3 + $0x60] sm:$0xf] %v444_v19  ;;  %vm398_vm1 = vmand %vm1045_vm4, %vm68_vm12 }
  0xd1   :  { %447 = vst [vmem:[#allocation3 + $0x98] sm:$0xf] %v443_v21  ;;  %v150_v23 = vpop.permute.xlu2 %149 }
  0xd2   :  { %v158_v24 = vsel %vm157_vm5, %v1001_v20, %v150_v23  ;;  %v159_v26 = vsel %vm157_vm5, %v150_v23, %v989_v12  ;;  %vm518_vm5 = vmand %vm1051_vm8, %vm192_vm9 }
  0xd3   :  { %v166_v27 = vsel %vm1069_vm2, %v158_v24, 0.0  ;;  %v175_v28 = vrot.slane %v159_v26, 4  ;;  %vm516_vm9 = vmand %vm1045_vm4, %vm190_vm14 }
  0xd4   :  { %v174_v58 = vrot.slane %v166_v27, 4 }
  0xd5   :  { %v425_v25 = vpop.permute.xlu1 %424  ;;  %183 = vst [vmem:[#allocation3 + $0x38] sm:$0xf0] %v175_v28 }
  0xd6   :  { %v434_v29 = vsel %vm432_vm10, %v425_v25, %v427_v61  ;;  %v423_v30 = vpop.permute.xlu0 %422  ;;  %182 = vst [vmem:[#allocation3] sm:$0xf0] %v174_v58  ;;  %v576_v61 = vld [vmem:[#allocation3 + $0x8] sm:$0xff] }
  0xd7   :  { %v442_v20 = vsel %vm398_vm1, %v434_v29, 0.0  ;;  %v433_v31 = vsel %vm432_vm10, %v423_v30, %v425_v25 }
  0xd8   :  { %446 = vst [vmem:[#allocation3 + $0x10] sm:$0xf] %v442_v20  ;;  %v441_v12 = vsel %vm67_vm11, %v433_v31, 0.0 }
  0xd9   :  { %445 = vst [vmem:[#allocation3 + $0x58] sm:$0xf] %v441_v12  ;;  %v97_v18 = vpop.permute.xlu2 %96 }
  0xdd   :  { %v545_v34 = vpop.permute.xlu1 %544 }
  0xde   :  { %v480_v35 = vpop.permute.xlu0 %479 }
  0xdf   :  { %v486_v36 = vsel %vm483_vm0, %v478_v3, %v480_v35  ;;  %v487_v37 = vsel %vm483_vm0, %v480_v35, %v482_v5  ;;  %v574_v3 = vld [vmem:[#allocation3 + $0x78] sm:$0xff]  ;;  %v581_v17 = vld [vmem:[#allocation3 + $0x10] sm:$0xff] }
  0xe0   :  { %v495_v38 = vsel %vm1051_vm8, %v487_v37, 0.0  ;;  %v502_v39 = vrot.slane %v486_v36, 4  ;;  %vm592_vm8 = vcmask 1043456  }
  0xe1   :  { %v503_v40 = vrot.slane %v495_v38, 4 }
  0xe2   :  { %510 = vst [vmem:[#allocation3 + $0x98] sm:$0xf0] %v502_v39 }
  0xe3   :  { %511 = vst [vmem:[#allocation3 + $0x60] sm:$0xf0] %v503_v40 }
  0xe5   :  { %v547_v41 = vpop.permute.xlu1 %546 }
  0xe6   :  { %v553_v42 = vsel %vm550_vm3, %v545_v34, %v547_v41  ;;  %v554_v43 = vsel %vm550_vm3, %v547_v41, %v1029_v49  ;;  %v474_v44 = vpop.permute.xlu0 %473 }
  0xe7   :  { %v561_v45 = vsel %vm191_vm6, %v553_v42, 0.0  ;;  %v562_v46 = vsel %vm518_vm5, %v554_v43, 0.0  ;;  %v484_v47 = vsel %vm483_vm0, %v474_v44, %v476_v13  ;;  %vm1115_vm6 = vmand %vm1069_vm2, %vm189_vm15  ;;  %v567_v13 = vld [vmem:[#allocation8] sm:$0xff] }
  0xe8   :  { %565 = vst [vmem:[#allocation3 + $0x70] sm:$0xf] %v561_v45  ;;  %v500_v48 = vrot.slane %v484_v47, 4 }
  0xe9   :  { %566 = vst [vmem:[#allocation3 + $0x90] sm:$0xf] %v562_v46  ;;  %v582_v55 = vld [vmem:[#allocation3 + $0x98] sm:$0xff] }
  0xea   :  { %508 = vst [vmem:[#allocation3 + $0x58] sm:$0xf0] %v500_v48  ;;  %v583_v56 = vld [vmem:[#allocation3 + $0x60] sm:$0xff] }
  0xed   :  { %v543_v2 = vpop.permute.xlu1 %542 }
  0xee   :  { %v552_v49 = vsel %vm550_vm3, %v543_v2, %v545_v34  ;;  %v541_v50 = vpop.permute.xlu0 %540 }
  0xef   :  { %v560_v51 = vsel %vm516_vm9, %v552_v49, 0.0  ;;  %v551_v0 = vsel %vm550_vm3, %v541_v50, %v543_v2  ;;  %v586_v52 = vld [vmem:[#allocation3 + $0x70] sm:$0xf] }
  0xf0   :  { %564 = vst [vmem:[#allocation3 + $0x48] sm:$0xf] %v560_v51  ;;  %v559_v53 = vsel %vm189_vm15, %v551_v0, 0.0  ;;  %776 = vmatpush.msk.msra.mxu2 %vm592_vm8, %v586_v52  ;;  %v587_v54 = vld [vmem:[#allocation3 + $0x90] sm:$0xf]  ;;  %vm588_vm15 = vcmask 293888  }
  0xf1   :  { %563 = vst [vmem:[#allocation3 + $0x20] sm:$0xf] %v559_v53  ;;  %778 = vmatpush.msk.msra.mxu3 %vm592_vm8, %v587_v54  ;;  %v580_v16 = vld [vmem:[#allocation3 + $0x58] sm:$0xff] }
  0xf2   :  { %657 = vmatpush.msra.mxu2 %v582_v55 }
  0xf3   :  { %677 = vmatpush.msra.mxu3 %v583_v56 }
  0xf4   :  { %658 = vmatpush.msra.mxu2 %v578_v57 }
  0xf5   :  { %678 = vmatpush.msra.mxu3 %v579_v59  ;;  %v221_v60 = vpop.permute.xlu1 %220 }
  0xf6   :  { %v230_v4 = vsel %vm228_vm7, %v221_v60, %v964_v1  ;;  %v219_v5 = vpop.permute.xlu0 %218  ;;  %659 = vmatpush.msra.mxu2 %v574_v3  ;;  %v571_v1 = vld [vmem:[#allocation3 + $0x18] sm:$0xff] }
  0xf7   :  { %v238_v8 = vsel %vm190_vm14, %v230_v4, 0.0  ;;  %v229_v9 = vsel %vm228_vm7, %v219_v5, %v221_v60  ;;  %679 = vmatpush.msra.mxu3 %v575_v7  ;;  %v585_v10 = vld [vmem:[#allocation3 + $0x48] sm:$0xf]  ;;  %vm71_vm7 = vmand %vm1069_vm2, %vm67_vm11  ;;  %vm1159_vm14 = vcmask 138240  }
  0xf8   :  { %242 = vst [vmem:[#allocation3 + $0x68] sm:$0xf] %v238_v8  ;;  %v237_v14 = vsel %vm1115_vm6, %v229_v9, 0.0  ;;  %v584_v15 = vld [vmem:[#allocation3 + $0x20] sm:$0xf]  ;;  %774 = vmatpush.msk.msra.mxu1 %vm592_vm8, %v585_v10  ;;  %660 = vmatpush.msra.mxu2 %v570_v11  ;;  %vm1160_vm0 = vmmov %vm1159_vm14 }
  0xf9   :  { %241 = vst [vmem:[#allocation3 + $0x30] sm:$0xf] %v237_v14  ;;  %772 = vmatpush.msk.msra.mxu0 %vm592_vm8, %v584_v15  ;;  %680 = vmatpush.msra.mxu3 %v571_v1 }
  0xfa   :  { %777 = vmatmul.msk.f32.vlgmr.msra.gmra.mxu2 %vm588_vm15, %v567_v13  ;;  %779 = vmatmul.msk.f32.vlgmr.msra.gmra.mxu3 %vm588_vm15, %v567_v13 }
  0xfb   :  { %617 = vmatpush.msra.mxu0 %v580_v16  ;;  %637 = vmatpush.msra.mxu1 %v581_v17 }
  0xfd   :  { %618 = vmatpush.msra.mxu0 %v576_v61  ;;  %638 = vmatpush.msra.mxu1 %v577_v63 }
  0xfe   :  { %v99_v19 = vpop.permute.xlu0 %98 }
  0xff   :  { %v107_v21 = vsel %vm1159_vm14, %v97_v18, %v99_v19  ;;  %v108_v23 = vsel %vm1160_vm0, %v99_v19, %v983_v6  ;;  %v573_v24 = vld [vmem:[#allocation3 + $0x68] sm:$0xff] }
 0x100   :  { %v115_v26 = vsel %vm71_vm7, %v107_v21, 0.0  ;;  %v116_v27 = vsel %vm68_vm12, %v108_v23, 0.0  ;;  %v572_v28 = vld [vmem:[#allocation3 + $0x30] sm:$0xff]  ;;  %639 = vmatpush.msra.mxu1 %v573_v24 }
 0x101   :  { %119 = vst [vmem:[#allocation3] sm:$0xf] %v115_v26  ;;  %619 = vmatpush.msra.mxu0 %v572_v28 }
 0x102   :  { %120 = vst [vmem:[#allocation3 + $0x38] sm:$0xf] %v116_v27 }
 0x108   :  { %v568_v32 = vld [vmem:[#allocation3] sm:$0xff] }
 0x109   :  { %620 = vmatpush.msra.mxu0 %v568_v32  ;;  %v569_v22 = vld [vmem:[#allocation3 + $0x38] sm:$0xff] }
 0x10a   :  { %640 = vmatpush.msra.mxu1 %v569_v22  ;;  %773 = vmatmul.msk.f32.vlgmr.msra.gmra.mxu0 %vm588_vm15, %v567_v13 }
 0x10b   :  { %775 = vmatmul.msk.f32.vlgmr.msra.gmra.mxu1 %vm588_vm15, %v567_v13 }
 0x17d   :  { %v662_v58 = vpop.f32.mrf.mxu2  ;;  %v682_v6 = vpop.f32.mrf.mxu3 }
 0x17e   :  { %v722_v25 = vadd.f32 %v682_v6, %v662_v58 }
 0x180   :  { %723 = vadd.xlane.f32.xlu2 %v722_v25 }
 0x187   :  { %v622_v29 = vpop.f32.mrf.mxu0 }
 0x188   :  { %v642_v33 = vpop.f32.mrf.mxu1 }
 0x189   :  { %v693_v30 = vadd.f32 %v642_v33, %v622_v29 }
 0x18b   :  { %694 = vadd.xlane.f32.xlu1 %v693_v30 }
 0x1f3   :  { %v724_v20 = vpop.xlane.xlu2 %723 }
 0x1f4   :  { %v725_v31 = vmul.f32 0.00390625, %v724_v20 }
 0x1f6   :  { %v726_v12 = vsub.f32 %v662_v58, %v725_v31  ;;  %v727_v34 = vsub.f32 %v682_v6, %v725_v31 }
 0x1f8   :  { %v728_v35 = vmul.f32 %v726_v12, %v726_v12  ;;  %v729_v36 = vmul.f32 %v727_v34, %v727_v34 }
 0x1fa   :  { %v730_v37 = vadd.f32 %v729_v36, %v728_v35 }
 0x1fc   :  { %731 = vadd.xlane.f32.xlu2 %v730_v37 }
 0x1fe   :  { %v695_v38 = vpop.xlane.xlu1 %694 }
 0x1ff   :  { %v696_v39 = vmul.f32 0.00390625, %v695_v38 }
 0x201   :  { %v697_v40 = vsub.f32 %v622_v29, %v696_v39  ;;  %v698_v41 = vsub.f32 %v642_v33, %v696_v39 }
 0x203   :  { %v699_v42 = vmul.f32 %v697_v40, %v697_v40  ;;  %v700_v43 = vmul.f32 %v698_v41, %v698_v41 }
 0x205   :  { %v701_v44 = vadd.f32 %v700_v43, %v699_v42 }
 0x207   :  { %702 = vadd.xlane.f32.xlu0 %v701_v44 }
 0x26f   :  { %v732_v45 = vpop.xlane.xlu2 %731 }
 0x270   :  { %v733_v46 = vmul.f32 0.00390625, %v732_v45 }
 0x272   :  { %v734_v47 = vadd.f32 1e-05, %v733_v46 }
 0x274   :  { %794 = vrsqrt.f32 %v734_v47  ;;  %vm741_vm11 = vweird.f32 %v734_v47 }
 0x27a   :  { %v795_v48 = vpop.eup %794  ;;  %v703_v2 = vpop.xlane.xlu0 %702 }
 0x27b   :  { %v736_v49 = vmul.f32 %v795_v48, %v734_v47  ;;  %v704_v50 = vmul.f32 0.00390625, %v703_v2  ;;  %vm742_vm2 = vweird.f32 %v795_v48 }
 0x27c   :  { %vm743_vm12 = vmor %vm741_vm11, %vm742_vm2 }
 0x27d   :  { %v737_v51 = vmul.f32 %v795_v48, %v736_v49  ;;  %v705_v0 = vadd.f32 1e-05, %v704_v50 }
 0x27f   :  { %v738_v52 = vmul.f32 0.5, %v737_v51  ;;  %796 = vrsqrt.f32 %v705_v0  ;;  %vm712_vm10 = vweird.f32 %v705_v0 }
 0x281   :  { %v739_v53 = vsub.f32 1.5, %v738_v52 }
 0x283   :  { %v740_v54 = vmul.f32 %v795_v48, %v739_v53 }
 0x285   :  { %v797_v55 = vpop.eup %796  ;;  %v744_v56 = vsel %vm743_vm12, %v795_v48, %v740_v54 }
 0x286   :  { %v745_v57 = vmul.f32 %v744_v56, %v726_v12  ;;  %v746_v59 = vmul.f32 %v744_v56, %v727_v34  ;;  %v707_v60 = vmul.f32 %v797_v55, %v705_v0  ;;  %vm713_vm4 = vweird.f32 %v797_v55 }
 0x287   :  { %vm714_vm13 = vmor %vm712_vm10, %vm713_vm4 }
 0x288   :  { %v747_v62 = vmax.f32 %v745_v57, 0.0  ;;  %v748_v3 = vmax.f32 %v746_v59, 0.0  ;;  %v708_v4 = vmul.f32 %v797_v55, %v707_v60 }
 0x28a   :  { %750 = vst [vmem:[#allocation10 + $0x10] sm:$0xff] %v747_v62  ;;  %v709_v5 = vmul.f32 0.5, %v708_v4 }
 0x28b   :  { %751 = vst [vmem:[#allocation10 + $0x18] sm:$0xff] %v748_v3 }
 0x28c   :  { %v710_v7 = vsub.f32 1.5, %v709_v5 }
 0x28e   :  { %v711_v8 = vmul.f32 %v797_v55, %v710_v7 }
 0x290   :  { %v715_v9 = vsel %vm714_vm13, %v797_v55, %v711_v8 }
 0x291   :  { %v716_v10 = vmul.f32 %v715_v9, %v697_v40  ;;  %v717_v11 = vmul.f32 %v715_v9, %v698_v41 }
 0x293   :  { %v718_v13 = vmax.f32 %v716_v10, 0.0  ;;  %v719_v14 = vmax.f32 %v717_v11, 0.0 }
 0x295   :  { %720 = vst [vmem:[#allocation10] sm:$0xff] %v718_v13 }
 0x296   :  { %721 = vst [vmem:[#allocation10 + $0x8] sm:$0xff] %v719_v14 }
 0x297   :  { %764 = dma.vmem_to_hbm [thread:$0]  %s757_s28, 512, %s759_s3, [#allocation7], %s889_s4, %s889_s4, %s881_s1  }
 0x298   :  { %874 = dma.done.wait [#allocation7], 512  }
 0x299   :  { %875 = vsyncadd [#allocation7], 4294966784 }
 0x29a   :  { %769 = vsyncpa [#allocation6], 1 }
 0x29b   :  { %770 = vsyncpa [#allocation9], 1 }
 0x29c   :  { %771 = vsyncpa [#allocation7], 1 }

</bundles_post_ra>
